<compile_context>
chip_gen: v5e
topology: v5e:2x2
jax: 0.10.0
libtpu: 0.0.40
codegen_flags: <defaults>
</compile_context>

<pallas_src>
import math

import jax
import jax.numpy as jnp
from jax.experimental import pallas as pl
from jax.experimental.pallas import tpu as pltpu


def _myarc_cos_kernel(o_ref, t_ref, aa_ref):
    # o_ref, t_ref: (C, TN) VMEM tiles — channels on sublanes, pixels on lanes.
    # Upcast to f32 in-kernel (inputs may be bf16/f16); all math in f32.
    o = o_ref[...].astype(jnp.float32)
    t = t_ref[...].astype(jnp.float32)
    s = jnp.sum(o * t, axis=0, keepdims=True) + 1e-10
    n1 = jnp.sqrt(jnp.sum(o * o, axis=0, keepdims=True)) + 1e-10
    n2 = jnp.sqrt(jnp.sum(t * t, axis=0, keepdims=True)) + 1e-10
    # Single divide (fused n1*n2) instead of s/n1/n2: slims the sublane-sparse
    # (1, TN) epilogue; stays well inside the 1e-4 tolerance vs PyTorch order.
    aa = jnp.clip(s / (n1 * n2), -1.0, 1.0)
    aa_ref[...] = aa.astype(aa_ref.dtype)


def _device_kind() -> str:
    try:
        return jax.devices()[0].device_kind.lower()
    except Exception:
        return ""


def _build_cos_call(C, N, tn, *, core_parallel, input_buffers, vmem_limit_bytes):
    if input_buffers != 2:
        in_spec = pl.BlockSpec((C, tn), lambda i: (0, i),
                               pipeline_mode=pl.Buffered(input_buffers))
    else:
        in_spec = pl.BlockSpec((C, tn), lambda i: (0, i))

    if core_parallel and hasattr(pltpu, "CORE_PARALLEL"):
        semantics = (pltpu.CORE_PARALLEL,)      # split pixel grid over both TCs (v7x)
    else:
        semantics = ("parallel",)

    cp_kwargs = dict(dimension_semantics=semantics)
    if vmem_limit_bytes is not None:
        cp_kwargs["vmem_limit_bytes"] = int(vmem_limit_bytes)

    return pl.pallas_call(
        _myarc_cos_kernel,
        out_shape=jax.ShapeDtypeStruct((1, N), jnp.float32),
        grid_spec=pltpu.PrefetchScalarGridSpec(
            num_scalar_prefetch=0,
            grid=(pl.cdiv(N, tn),),
            in_specs=[in_spec, in_spec],
            out_specs=pl.BlockSpec((1, tn), lambda i: (0, i)),
        ),
        compiler_params=pltpu.CompilerParams(**cp_kwargs),
    )


def myarc_loss(output, target, *, tn=None):
    """Pallas implementation of MyarcLoss.forward; returns a scalar f32 loss."""
    assert output.shape == target.shape, "output/target shapes must match"
    C = output.shape[0]
    N = int(math.prod(output.shape[1:])) if output.ndim > 1 else 1

    # Keep native floating dtype (no HBM-doubling wrapper pre-cast).
    if not jnp.issubdtype(output.dtype, jnp.floating):
        output = output.astype(jnp.float32)
    if not jnp.issubdtype(target.dtype, jnp.floating):
        target = target.astype(jnp.float32)

    # Free reshape (no transpose / padding): channels on sublanes, pixels on lanes.
    o2 = output.reshape(C, N)
    t2 = target.reshape(C, N)

    kind = _device_kind()
    is_v7 = "v7" in kind
    o_item = jnp.dtype(o2.dtype).itemsize
    t_item = jnp.dtype(t2.dtype).itemsize
    itemsize = max(o_item, t_item)

    # Pixel-tile sizing: ~2 MiB per streamed input buffer on v5e/v6e (already
    # HBM-bound there), ~4 MiB on v7x (3.2 TB/s -> hide the ~0.35 us/step fixed
    # cost).  Floor at 128 lanes, cap at the 128-rounded pixel count.
    target_bytes = (4 if is_v7 else 2) * 1024 * 1024
    if tn is None:
        tn = max(128, (target_bytes // (itemsize * C) // 128) * 128)
    tn = min(tn, pl.cdiv(N, 128) * 128)

    # Input multi-buffering: 3-deep on v7x (compute ~ DMA per step), default
    # double-buffering elsewhere.
    input_buffers = 3 if is_v7 else 2

    # Scoped-VMEM guard (also covers very large channel counts): request an
    # explicit limit only when the footprint outgrows the 16 MiB v5e default.
    footprint = input_buffers * C * tn * (o_item + t_item) + 2 * tn * 4
    vmem_limit_bytes = None
    if footprint + (2 << 20) > (16 << 20):
        vmem_limit_bytes = footprint + (2 << 20)

    def _run(core_parallel, nbuf):
        call = _build_cos_call(C, N, tn,
                               core_parallel=core_parallel,
                               input_buffers=nbuf,
                               vmem_limit_bytes=vmem_limit_bytes)
        return call(o2, t2)

    try:
        aa = _run(is_v7, input_buffers)       # v7x fast path; plain parallel elsewhere
    except Exception:
        aa = _run(False, 2)                   # conservative fallback

    # TODO(synk): arccos has no guaranteed Pallas TPU lowering; applied in JAX
    # to the tiny (N,) cosine map (negligible vs the (C, N) inputs).
    spectralmap = jnp.arccos(aa[0])
    return jnp.mean(spectralmap)


def _myarc_loss_ref(output, target):
    """Pure-JAX reference matching the PyTorch forward exactly (f32 math)."""
    output = output.astype(jnp.float32)
    target = target.astype(jnp.float32)
    sum2 = jnp.sum(output * target, axis=0) + 1e-10
    norm_abs1 = jnp.sqrt(jnp.sum(output * output, axis=0)) + 1e-10
    norm_abs2 = jnp.sqrt(jnp.sum(target * target, axis=0)) + 1e-10
    aa = jnp.clip(sum2 / norm_abs1 / norm_abs2, -1.0, 1.0)
    return jnp.mean(jnp.arccos(aa))


if __name__ == "__main__":
    key = jax.random.PRNGKey(0)
    k1, k2 = jax.random.split(key)

    C, H, W = 8, 16, 16

    # float32 inputs
    out_f32 = jax.random.normal(k1, (C, H, W), dtype=jnp.float32)
    tgt_f32 = jax.random.normal(k2, (C, H, W), dtype=jnp.float32)
    loss = jax.block_until_ready(myarc_loss(out_f32, tgt_f32))
    ref = _myarc_loss_ref(out_f32, tgt_f32)
    assert loss.shape == ()
    assert jnp.allclose(loss, ref, atol=1e-4, rtol=1e-4), (loss, ref)

    # bfloat16 inputs — exercises the native-dtype streaming + in-kernel upcast
    out_bf = out_f32.astype(jnp.bfloat16)
    tgt_bf = tgt_f32.astype(jnp.bfloat16)
    loss_bf = jax.block_until_ready(myarc_loss(out_bf, tgt_bf))
    ref_bf = _myarc_loss_ref(out_bf, tgt_bf)
    assert jnp.allclose(loss_bf, ref_bf, atol=1e-3, rtol=1e-3), (loss_bf, ref_bf)

    print("KERNEL_OK")
</pallas_src>

<mosaic_0001>
module attributes {stable_mosaic.version = 11 : i64} {
  func.func @_myarc_cos_kernel(%arg0: i32, %arg1: memref<8x256xf32, #tpu.memory_space<vmem>>, %arg2: memref<8x256xf32, #tpu.memory_space<vmem>>, %arg3: memref<1x256xf32, #tpu.memory_space<vmem>>) attributes {dimension_semantics = [#tpu.dimension_semantics<parallel>], iteration_bounds = array<i64: 1>, scalar_prefetch = 0 : i64, scratch_operands = 0 : i64, tpu.core_type = #tpu.core_type<tc>, window_params = [{transform_indices = @transform_0, window_bounds = array<i64: 8, 256>}, {transform_indices = @transform_1, window_bounds = array<i64: 8, 256>}, {transform_indices = @transform_2, window_bounds = array<i64: 1, 256>}]} {
    %c0 = arith.constant 0 : index
    %c0_0 = arith.constant 0 : index
    %0 = vector.load %arg1[%c0, %c0_0] : memref<8x256xf32, #tpu.memory_space<vmem>>, vector<8x256xf32>
    %c0_1 = arith.constant 0 : index
    %c0_2 = arith.constant 0 : index
    %1 = vector.load %arg2[%c0_1, %c0_2] : memref<8x256xf32, #tpu.memory_space<vmem>>, vector<8x256xf32>
    %2 = arith.mulf %0, %1 : vector<8x256xf32>
    %cst = arith.constant dense<0.000000e+00> : vector<256xf32>
    %3 = vector.multi_reduction <add>, %2, %cst [0] : vector<8x256xf32> to vector<256xf32>
    %4 = vector.shape_cast %3 : vector<256xf32> to vector<1x256xf32>
    %cst_3 = arith.constant 1.000000e-10 : f32
    %5 = vector.broadcast %cst_3 : f32 to vector<1x256xf32>
    %6 = arith.addf %4, %5 : vector<1x256xf32>
    %7 = arith.mulf %0, %0 : vector<8x256xf32>
    %cst_4 = arith.constant dense<0.000000e+00> : vector<256xf32>
    %8 = vector.multi_reduction <add>, %7, %cst_4 [0] : vector<8x256xf32> to vector<256xf32>
    %9 = vector.shape_cast %8 : vector<256xf32> to vector<1x256xf32>
    %10 = math.sqrt %9 : vector<1x256xf32>
    %cst_5 = arith.constant 1.000000e-10 : f32
    %11 = vector.broadcast %cst_5 : f32 to vector<1x256xf32>
    %12 = arith.addf %10, %11 : vector<1x256xf32>
    %13 = arith.mulf %1, %1 : vector<8x256xf32>
    %cst_6 = arith.constant dense<0.000000e+00> : vector<256xf32>
    %14 = vector.multi_reduction <add>, %13, %cst_6 [0] : vector<8x256xf32> to vector<256xf32>
    %15 = vector.shape_cast %14 : vector<256xf32> to vector<1x256xf32>
    %16 = math.sqrt %15 : vector<1x256xf32>
    %cst_7 = arith.constant 1.000000e-10 : f32
    %17 = vector.broadcast %cst_7 : f32 to vector<1x256xf32>
    %18 = arith.addf %16, %17 : vector<1x256xf32>
    %19 = arith.mulf %12, %18 : vector<1x256xf32>
    %20 = arith.divf %6, %19 : vector<1x256xf32>
    %cst_8 = arith.constant -1.000000e+00 : f32
    %cst_9 = arith.constant 1.000000e+00 : f32
    %21 = vector.broadcast %cst_8 : f32 to vector<1x256xf32>
    %22 = arith.maximumf %21, %20 : vector<1x256xf32>
    %23 = vector.broadcast %cst_9 : f32 to vector<1x256xf32>
    %24 = arith.minimumf %23, %22 : vector<1x256xf32>
    %c0_10 = arith.constant 0 : index
    %c0_11 = arith.constant 0 : index
    %25 = vector.load %arg3[%c0_10, %c0_11] : memref<1x256xf32, #tpu.memory_space<vmem>>, vector<1x256xf32>
    tpu.vector_store %arg3[%c0_10, %c0_11], %24 {strides = array<i32>} : memref<1x256xf32, #tpu.memory_space<vmem>>, vector<1x256xf32>,
    return
  }
  func.func @transform_0(%arg0: i32) -> (i32, i32) {
    %c0_i32 = arith.constant 0 : i32
    %c0_i32_0 = arith.constant 0 : i32
    return %c0_i32, %arg0 : i32, i32
  }
  func.func @transform_1(%arg0: i32) -> (i32, i32) {
    %c0_i32 = arith.constant 0 : i32
    %c0_i32_0 = arith.constant 0 : i32
    return %c0_i32, %arg0 : i32, i32
  }
  func.func @transform_2(%arg0: i32) -> (i32, i32) {
    %c0_i32 = arith.constant 0 : i32
    %c0_i32_0 = arith.constant 0 : i32
    return %c0_i32, %arg0 : i32, i32
  }
}

module attributes {stable_mosaic.version = 11 : i64} {
  func.func @_myarc_cos_kernel(%arg0: i32, %arg1: memref<8x256xf32, #tpu.memory_space<vmem>>, %arg2: memref<8x256xf32, #tpu.memory_space<vmem>>, %arg3: memref<1x256xf32, #tpu.memory_space<vmem>>) attributes {dimension_semantics = [#tpu.dimension_semantics<parallel>], iteration_bounds = array<i64: 1>, scalar_prefetch = 0 : i64, scratch_operands = 0 : i64, tpu.core_type = #tpu.core_type<tc>, window_params = [{transform_indices = @transform_0, window_bounds = array<i64: 8, 256>}, {transform_indices = @transform_1, window_bounds = array<i64: 8, 256>}, {transform_indices = @transform_2, window_bounds = array<i64: 1, 256>}]} {
    %c0 = arith.constant 0 : index
    %c0_0 = arith.constant 0 : index
    %0 = vector.load %arg1[%c0, %c0_0] : memref<8x256xf32, #tpu.memory_space<vmem>>, vector<8x256xf32>
    %c0_1 = arith.constant 0 : index
    %c0_2 = arith.constant 0 : index
    %1 = vector.load %arg2[%c0_1, %c0_2] : memref<8x256xf32, #tpu.memory_space<vmem>>, vector<8x256xf32>
    %2 = arith.mulf %0, %1 : vector<8x256xf32>
    %cst = arith.constant dense<0.000000e+00> : vector<256xf32>
    %3 = vector.multi_reduction <add>, %2, %cst [0] : vector<8x256xf32> to vector<256xf32>
    %4 = vector.shape_cast %3 : vector<256xf32> to vector<1x256xf32>
    %cst_3 = arith.constant 1.000000e-10 : f32
    %5 = vector.broadcast %cst_3 : f32 to vector<1x256xf32>
    %6 = arith.addf %4, %5 : vector<1x256xf32>
    %7 = arith.mulf %0, %0 : vector<8x256xf32>
    %cst_4 = arith.constant dense<0.000000e+00> : vector<256xf32>
    %8 = vector.multi_reduction <add>, %7, %cst_4 [0] : vector<8x256xf32> to vector<256xf32>
    %9 = vector.shape_cast %8 : vector<256xf32> to vector<1x256xf32>
    %10 = math.sqrt %9 : vector<1x256xf32>
    %cst_5 = arith.constant 1.000000e-10 : f32
    %11 = vector.broadcast %cst_5 : f32 to vector<1x256xf32>
    %12 = arith.addf %10, %11 : vector<1x256xf32>
    %13 = arith.mulf %1, %1 : vector<8x256xf32>
    %cst_6 = arith.constant dense<0.000000e+00> : vector<256xf32>
    %14 = vector.multi_reduction <add>, %13, %cst_6 [0] : vector<8x256xf32> to vector<256xf32>
    %15 = vector.shape_cast %14 : vector<256xf32> to vector<1x256xf32>
    %16 = math.sqrt %15 : vector<1x256xf32>
    %cst_7 = arith.constant 1.000000e-10 : f32
    %17 = vector.broadcast %cst_7 : f32 to vector<1x256xf32>
    %18 = arith.addf %16, %17 : vector<1x256xf32>
    %19 = arith.mulf %12, %18 : vector<1x256xf32>
    %20 = arith.divf %6, %19 : vector<1x256xf32>
    %cst_8 = arith.constant -1.000000e+00 : f32
    %cst_9 = arith.constant 1.000000e+00 : f32
    %21 = vector.broadcast %cst_8 : f32 to vector<1x256xf32>
    %22 = arith.maximumf %21, %20 : vector<1x256xf32>
    %23 = vector.broadcast %cst_9 : f32 to vector<1x256xf32>
    %24 = arith.minimumf %23, %22 : vector<1x256xf32>
    %c0_10 = arith.constant 0 : index
    %c0_11 = arith.constant 0 : index
    %25 = vector.load %arg3[%c0_10, %c0_11] : memref<1x256xf32, #tpu.memory_space<vmem>>, vector<1x256xf32>
    tpu.vector_store %arg3[%c0_10, %c0_11], %24 {strides = array<i32>} : memref<1x256xf32, #tpu.memory_space<vmem>>, vector<1x256xf32>,
    return
  }
  func.func @transform_0(%arg0: i32) -> (i32, i32) {
    %c0_i32 = arith.constant 0 : i32
    %c0_i32_0 = arith.constant 0 : i32
    return %c0_i32, %arg0 : i32, i32
  }
  func.func @transform_1(%arg0: i32) -> (i32, i32) {
    %c0_i32 = arith.constant 0 : i32
    %c0_i32_0 = arith.constant 0 : i32
    return %c0_i32, %arg0 : i32, i32
  }
  func.func @transform_2(%arg0: i32) -> (i32, i32) {
    %c0_i32 = arith.constant 0 : i32
    %c0_i32_0 = arith.constant 0 : i32
    return %c0_i32, %arg0 : i32, i32
  }
}

</mosaic_0001>

<bundles_post_ra>
// kernel: tpu_custom_call.1
= control target key start
LH: loop header
LB: loop body
LE: loop exit
PB: predicated region body
PF: predicated region fallthrough
CT: control target
= control target key end

     0   :  { %7 = vsyncpa [#allocation3], 0  ;;  %s341_s0 = inlined_call_operand.hbm [shape: f32[8,256], index: 0, kind: input, shape index: {}]   ;;  %s342_s1 = inlined_call_operand.hbm [shape: f32[8,256], index: 1, kind: input, shape index: {}]   ;;  %s343_s2 = inlined_call_operand.hbm [shape: f32[1,256], index: 2, kind: output, shape index: {}]  }
   0x1   :  { %8 = vsyncpa [#allocation6], 0 }
   0x2   :  { %9 = vsyncpa [#allocation4], 0  ;;  %s15_s11 = sshll.u32 %s341_s0, 4  ;;  %s300_s12 = smov [#allocation2]   ;;  %s16_s11 = int_to_ptr.hbm [resolvable:$true] %s15_s11 }
   0x3   :  { %s17_s13 = sshll.u32 %s300_s12, 4  ;;  %s26_s16 = sshll.u32 %s342_s1, 4  ;;  %s18_s13 = int_to_ptr.vmem [resolvable:$true] %s17_s13  ;;  %s27_s16 = int_to_ptr.hbm [resolvable:$true] %s26_s16 }
   0x4   :  { %20 = dma.hbm_to_vmem [thread:$0]  %s16_s11, 256, %s18_s13, [#allocation3]  }
   0x5   :  { %s301_s17 = smov [#allocation5]  }
   0x6   :  { %s28_s18 = sshll.u32 %s301_s17, 4  ;;  %s29_s18 = int_to_ptr.vmem [resolvable:$true] %s28_s18 }
   0x7   :  { %31 = dma.hbm_to_vmem [thread:$0]  %s27_s16, 256, %s29_s18, [#allocation6]  }
   0x8   :  { %294 = dma.done.wait [#allocation3], 256  }
   0x9   :  { %295 = vsyncadd [#allocation3], 4294967040 }
   0xa   :  { %296 = dma.done.wait [#allocation6], 256  }
   0xb   :  { %297 = vsyncadd [#allocation6], 4294967040  ;;  %v40_v0 = vld [vmem:[#allocation2] sm:$0xff]  ;;  %v41_v1 = vld [vmem:[#allocation2 + $0x8] sm:$0xff]  ;;  %s302_s0 = smov [#allocation7]   ;;  %s194_s21 = sshll.u32 %s343_s2, 4  ;;  %s195_s21 = int_to_ptr.hbm [resolvable:$true] %s194_s21 }
   0xc   :  { %v42_v2 = vld [vmem:[#allocation5] sm:$0xff]  ;;  %v43_v3 = vld [vmem:[#allocation5 + $0x8] sm:$0xff]  ;;  %v60_v4 = vmul.f32 %v40_v0, %v40_v0  ;;  %v61_v5 = vmul.f32 %v41_v1, %v41_v1  ;;  %s192_s1 = sshll.u32 %s302_s0, 4  ;;  %s193_s1 = int_to_ptr.vmem [resolvable:$true] %s192_s1 }
   0xd   :  { %v100_v6 = vmul.f32 %v42_v2, %v42_v2  ;;  %v101_v7 = vmul.f32 %v43_v3, %v43_v3  ;;  %v44_v32 = vmul.f32 %v42_v2, %v40_v0  ;;  %v45_v34 = vmul.f32 %v43_v3, %v41_v1 }
   0xe   :  { %v62_v8 = vrot.slane %v60_v4, 4  ;;  %v68_v9 = vrot.slane %v61_v5, 4 }
   0xf   :  { %v102_v10 = vrot.slane %v100_v6, 4  ;;  %v108_v11 = vrot.slane %v101_v7, 4  ;;  %v46_v40 = vrot.slane %v44_v32, 4  ;;  %v52_v43 = vrot.slane %v45_v34, 4 }
  0x10   :  { %v63_v12 = vadd.f32 %v62_v8, %v60_v4  ;;  %v69_v13 = vadd.f32 %v68_v9, %v61_v5 }
  0x11   :  { %v103_v14 = vadd.f32 %v102_v10, %v100_v6  ;;  %v109_v15 = vadd.f32 %v108_v11, %v101_v7  ;;  %v47_v50 = vadd.f32 %v46_v40, %v44_v32  ;;  %v53_v53 = vadd.f32 %v52_v43, %v45_v34 }
  0x12   :  { %v64_v16 = vrot.slane %v63_v12, 2  ;;  %v70_v17 = vrot.slane %v69_v13, 2 }
  0x13   :  { %v104_v18 = vrot.slane %v103_v14, 2  ;;  %v110_v19 = vrot.slane %v109_v15, 2 }
  0x14   :  { %v65_v20 = vadd.f32 %v64_v16, %v63_v12  ;;  %v71_v21 = vadd.f32 %v70_v17, %v69_v13  ;;  %v48_v12 = vrot.slane %v47_v50, 2  ;;  %v54_v16 = vrot.slane %v53_v53, 2 }
  0x15   :  { %v105_v22 = vadd.f32 %v104_v18, %v103_v14  ;;  %v111_v23 = vadd.f32 %v110_v19, %v109_v15 }
  0x16   :  { %v66_v24 = vrot.slane %v65_v20, 1  ;;  %v72_v25 = vrot.slane %v71_v21, 1 }
  0x17   :  { %v106_v26 = vrot.slane %v105_v22, 1  ;;  %v112_v27 = vrot.slane %v111_v23, 1 }
  0x18   :  { %v67_v28 = vadd.f32 %v66_v24, %v65_v20  ;;  %v73_v29 = vadd.f32 %v72_v25, %v71_v21  ;;  %v49_v21 = vadd.f32 %v48_v12, %v47_v50 }
  0x19   :  { %v107_v30 = vadd.f32 %v106_v26, %v105_v22  ;;  %v324_v31 = vadd.f32 %v112_v27, %v111_v23  ;;  %v55_v23 = vadd.f32 %v54_v16, %v53_v53 }
  0x1a   :  { %210 = vrsqrt.f32 %v67_v28  ;;  %vm81_vm0 = vcmp.eq.f32.partialorder %v67_v28, inf  ;;  %vm83_vm1 = vcmp.eq.f32.partialorder %v67_v28, 0.0  ;;  %v84_v57 = vand.u32 2147483648, %v67_v28 }
  0x1b   :  { %212 = vrsqrt.f32 %v73_v29  ;;  %vm93_vm2 = vcmp.eq.f32.partialorder %v73_v29, inf  ;;  %vm95_vm3 = vcmp.eq.f32.partialorder %v73_v29, 0.0  ;;  %v96_v62 = vand.u32 2147483648, %v73_v29 }
  0x1c   :  { %214 = vrsqrt.f32 %v107_v30  ;;  %vm121_vm4 = vcmp.eq.f32.partialorder %v107_v30, inf  ;;  %vm123_vm5 = vcmp.eq.f32.partialorder %v107_v30, 0.0  ;;  %v124_v1 = vand.u32 2147483648, %v107_v30 }
  0x1d   :  { %216 = vrsqrt.f32 %v324_v31  ;;  %vm133_vm6 = vcmp.eq.f32.partialorder %v324_v31, inf  ;;  %v136_v5 = vand.u32 2147483648, %v324_v31  ;;  %vm135_vm7 = vcmp.eq.f32.partialorder %v324_v31, 0.0 }
  0x1e   :  { %v50_v24 = vrot.slane %v49_v21, 1  ;;  %v56_v25 = vrot.slane %v55_v23, 1 }
  0x20   :  { %v211_v33 = vpop.eup %210 }
  0x21   :  { %v213_v35 = vpop.eup %212  ;;  %v75_v36 = vmul.f32 %v211_v33, %v67_v28 }
  0x22   :  { %v215_v37 = vpop.eup %214  ;;  %v87_v38 = vmul.f32 %v213_v35, %v73_v29 }
  0x23   :  { %v217_v39 = vpop.eup %216  ;;  %v76_v41 = vmul.f32 %v211_v33, %v75_v36  ;;  %v115_v42 = vmul.f32 %v215_v37, %v107_v30 }
  0x24   :  { %v88_v44 = vmul.f32 %v213_v35, %v87_v38  ;;  %v127_v45 = vmul.f32 %v217_v39, %v324_v31 }
  0x25   :  { %v77_v46 = vmul.f32 0.5, %v76_v41  ;;  %v116_v47 = vmul.f32 %v215_v37, %v115_v42 }
  0x26   :  { %v89_v48 = vmul.f32 0.5, %v88_v44  ;;  %v128_v49 = vmul.f32 %v217_v39, %v127_v45 }
  0x27   :  { %v78_v51 = vsub.f32 1.5, %v77_v46  ;;  %v117_v52 = vmul.f32 0.5, %v116_v47 }
  0x28   :  { %v90_v54 = vsub.f32 1.5, %v89_v48  ;;  %v129_v55 = vmul.f32 0.5, %v128_v49 }
  0x29   :  { %v79_v56 = vmul.f32 %v211_v33, %v78_v51  ;;  %v118_v58 = vsub.f32 1.5, %v117_v52  ;;  %v182_v52 = vlaneseq }
  0x2a   :  { %v91_v59 = vmul.f32 %v213_v35, %v90_v54  ;;  %v130_v60 = vsub.f32 1.5, %v129_v55 }
  0x2b   :  { %v80_v61 = vmul.f32 %v79_v56, %v67_v28  ;;  %v119_v63 = vmul.f32 %v215_v37, %v118_v58 }
  0x2c   :  { %v92_v0 = vmul.f32 %v91_v59, %v73_v29  ;;  %v131_v2 = vmul.f32 %v217_v39, %v130_v60 }
  0x2d   :  { %v82_v3 = vsel %vm81_vm0, %v67_v28, %v80_v61  ;;  %v120_v4 = vmul.f32 %v119_v63, %v107_v30  ;;  %v51_v28 = vadd.f32 %v50_v24, %v49_v21  ;;  %vm179_vm0 = vcmask 1040384  }
  0x2e   :  { %v85_v6 = vsel %vm83_vm1, %v84_v57, %v82_v3  ;;  %v94_v7 = vsel %vm93_vm2, %v73_v29, %v92_v0  ;;  %v132_v8 = vmul.f32 %v131_v2, %v324_v31  ;;  %vm184_vm1 = vcmp.lt.s32.totalorder %v182_v52, 256 }
  0x2f   :  { %v97_v9 = vsel %vm95_vm3, %v96_v62, %v94_v7  ;;  %v98_v10 = vadd.f32 1e-10, %v85_v6  ;;  %v122_v11 = vsel %vm121_vm4, %v107_v30, %v120_v4  ;;  %v57_v30 = vadd.f32 %v56_v25, %v55_v23 }
  0x30   :  { %v99_v13 = vadd.f32 1e-10, %v97_v9  ;;  %v125_v14 = vsel %vm123_vm5, %v124_v1, %v122_v11  ;;  %v134_v15 = vsel %vm133_vm6, %v324_v31, %v132_v8  ;;  %v58_v41 = vadd.f32 1e-10, %v51_v28 }
  0x31   :  { %v137_v17 = vsel %vm135_vm7, %v136_v5, %v134_v15  ;;  %v138_v18 = vadd.f32 1e-10, %v125_v14  ;;  %v59_v44 = vadd.f32 1e-10, %v57_v30 }
  0x32   :  { %v139_v19 = vadd.f32 1e-10, %v137_v17 }
  0x33   :  { %v140_v20 = vmul.f32 %v138_v18, %v98_v10 }
  0x34   :  { %v141_v22 = vmul.f32 %v139_v19, %v99_v13 }
  0x35   :  { %218 = vrcp.f32 %v140_v20  ;;  %vm147_vm8 = vweird.f32 %v140_v20  ;;  %v153_v32 = vand.u32 2147483648, %v140_v20  ;;  %v151_v34 = vand.u32 2147483647, %v140_v20 }
  0x36   :  { %220 = vrcp.f32 %v141_v22  ;;  %v168_v35 = vand.u32 2147483648, %v141_v22  ;;  %vm162_vm10 = vweird.f32 %v141_v22  ;;  %v166_v37 = vand.u32 2147483647, %v141_v22 }
  0x37   :  { %v154_v39 = vor.u32 1.1754944e-38, %v153_v32  ;;  %vm152_vm13 = vcmp.eq.f32.partialorder %v151_v34, 8.507059e+37 }
  0x38   :  { %v169_v43 = vor.u32 1.1754944e-38, %v168_v35  ;;  %vm167_vm15 = vcmp.eq.f32.partialorder %v166_v37, 8.507059e+37 }
  0x3b   :  { %v219_v26 = vpop.eup %218 }
  0x3c   :  { %v221_v27 = vpop.eup %220  ;;  %v143_v29 = vmul.f32 %v219_v26, %v140_v20  ;;  %vm148_vm9 = vweird.f32 %v219_v26 }
  0x3d   :  { %v158_v31 = vmul.f32 %v221_v27, %v141_v22  ;;  %vm163_vm11 = vweird.f32 %v221_v27  ;;  %vm149_vm12 = vmor %vm147_vm8, %vm148_vm9 }
  0x3e   :  { %v144_v33 = vsub.f32 1.0, %v143_v29  ;;  %vm164_vm14 = vmor %vm162_vm10, %vm163_vm11 }
  0x3f   :  { %v159_v36 = vsub.f32 1.0, %v158_v31 }
  0x40   :  { %v145_v38 = vmul.f32 %v219_v26, %v144_v33 }
  0x41   :  { %v160_v40 = vmul.f32 %v221_v27, %v159_v36 }
  0x42   :  { %v146_v42 = vadd.f32 %v219_v26, %v145_v38 }
  0x43   :  { %v161_v45 = vadd.f32 %v221_v27, %v160_v40 }
  0x44   :  { %v150_v46 = vsel %vm149_vm12, %v219_v26, %v146_v42 }
  0x45   :  { %v155_v47 = vsel %vm152_vm13, %v154_v39, %v150_v46  ;;  %v165_v48 = vsel %vm164_vm14, %v221_v27, %v161_v45 }
  0x46   :  { %v156_v49 = vmul.f32 %v155_v47, %v58_v41  ;;  %v170_v50 = vsel %vm167_vm15, %v169_v43, %v165_v48 }
  0x47   :  { %v171_v51 = vmul.f32 %v170_v50, %v59_v44 }
  0x48   :  { %v205_v53 = vclamps-f32 %v156_v49, 1.0 }
  0x49   :  { %v206_v54 = vclamps-f32 %v171_v51, 1.0 }
  0x4b   :  { %v178_v55 = vrot.slane %v206_v54, 7 }
  0x4d   :  { %v180_v56 = vsel %vm179_vm0, %v205_v53, %v178_v55 }
  0x4e   :  { %186 = vst.msk [vmem:[#allocation7] sm:$0x3] %vm184_vm1, %v180_v56 }
  0x4f   :  { %197 = dma.vmem_to_hbm [thread:$0]  %s193_s1, 32, %s195_s21, [#allocation4]  }
  0x50   :  { %298 = dma.done.wait [#allocation4], 32  }
  0x51   :  { %299 = vsyncadd [#allocation4], 4294967264 }
  0x52   :  { %202 = vsyncpa [#allocation3], 1 }
  0x53   :  { %203 = vsyncpa [#allocation6], 1 }
  0x54   :  { %204 = vsyncpa [#allocation4], 1 }

// kernel: tpu_custom_call.1
= control target key start
LH: loop header
LB: loop body
LE: loop exit
PB: predicated region body
PF: predicated region fallthrough
CT: control target
= control target key end

     0   :  { %7 = vsyncpa [#allocation3], 0  ;;  %s341_s0 = inlined_call_operand.hbm [shape: f32[8,256], index: 0, kind: input, shape index: {}]   ;;  %s342_s1 = inlined_call_operand.hbm [shape: f32[8,256], index: 1, kind: input, shape index: {}]   ;;  %s343_s2 = inlined_call_operand.hbm [shape: f32[1,256], index: 2, kind: output, shape index: {}]  }
   0x1   :  { %8 = vsyncpa [#allocation6], 0 }
   0x2   :  { %9 = vsyncpa [#allocation4], 0  ;;  %s15_s11 = sshll.u32 %s341_s0, 4  ;;  %s300_s12 = smov [#allocation2]   ;;  %s16_s11 = int_to_ptr.hbm [resolvable:$true] %s15_s11 }
   0x3   :  { %s17_s13 = sshll.u32 %s300_s12, 4  ;;  %s26_s16 = sshll.u32 %s342_s1, 4  ;;  %s18_s13 = int_to_ptr.vmem [resolvable:$true] %s17_s13  ;;  %s27_s16 = int_to_ptr.hbm [resolvable:$true] %s26_s16 }
   0x4   :  { %20 = dma.hbm_to_vmem [thread:$0]  %s16_s11, 256, %s18_s13, [#allocation3]  }
   0x5   :  { %s301_s17 = smov [#allocation5]  }
   0x6   :  { %s28_s18 = sshll.u32 %s301_s17, 4  ;;  %s29_s18 = int_to_ptr.vmem [resolvable:$true] %s28_s18 }
   0x7   :  { %31 = dma.hbm_to_vmem [thread:$0]  %s27_s16, 256, %s29_s18, [#allocation6]  }
   0x8   :  { %294 = dma.done.wait [#allocation3], 256  }
   0x9   :  { %295 = vsyncadd [#allocation3], 4294967040 }
   0xa   :  { %296 = dma.done.wait [#allocation6], 256  }
   0xb   :  { %297 = vsyncadd [#allocation6], 4294967040  ;;  %v40_v0 = vld [vmem:[#allocation2] sm:$0xff]  ;;  %v41_v1 = vld [vmem:[#allocation2 + $0x8] sm:$0xff]  ;;  %s302_s0 = smov [#allocation7]   ;;  %s194_s21 = sshll.u32 %s343_s2, 4  ;;  %s195_s21 = int_to_ptr.hbm [resolvable:$true] %s194_s21 }
   0xc   :  { %v42_v2 = vld [vmem:[#allocation5] sm:$0xff]  ;;  %v43_v3 = vld [vmem:[#allocation5 + $0x8] sm:$0xff]  ;;  %v60_v4 = vmul.f32 %v40_v0, %v40_v0  ;;  %v61_v5 = vmul.f32 %v41_v1, %v41_v1  ;;  %s192_s1 = sshll.u32 %s302_s0, 4  ;;  %s193_s1 = int_to_ptr.vmem [resolvable:$true] %s192_s1 }
   0xd   :  { %v100_v6 = vmul.f32 %v42_v2, %v42_v2  ;;  %v101_v7 = vmul.f32 %v43_v3, %v43_v3  ;;  %v44_v32 = vmul.f32 %v42_v2, %v40_v0  ;;  %v45_v34 = vmul.f32 %v43_v3, %v41_v1 }
   0xe   :  { %v62_v8 = vrot.slane %v60_v4, 4  ;;  %v68_v9 = vrot.slane %v61_v5, 4 }
   0xf   :  { %v102_v10 = vrot.slane %v100_v6, 4  ;;  %v108_v11 = vrot.slane %v101_v7, 4  ;;  %v46_v40 = vrot.slane %v44_v32, 4  ;;  %v52_v43 = vrot.slane %v45_v34, 4 }
  0x10   :  { %v63_v12 = vadd.f32 %v62_v8, %v60_v4  ;;  %v69_v13 = vadd.f32 %v68_v9, %v61_v5 }
  0x11   :  { %v103_v14 = vadd.f32 %v102_v10, %v100_v6  ;;  %v109_v15 = vadd.f32 %v108_v11, %v101_v7  ;;  %v47_v50 = vadd.f32 %v46_v40, %v44_v32  ;;  %v53_v53 = vadd.f32 %v52_v43, %v45_v34 }
  0x12   :  { %v64_v16 = vrot.slane %v63_v12, 2  ;;  %v70_v17 = vrot.slane %v69_v13, 2 }
  0x13   :  { %v104_v18 = vrot.slane %v103_v14, 2  ;;  %v110_v19 = vrot.slane %v109_v15, 2 }
  0x14   :  { %v65_v20 = vadd.f32 %v64_v16, %v63_v12  ;;  %v71_v21 = vadd.f32 %v70_v17, %v69_v13  ;;  %v48_v12 = vrot.slane %v47_v50, 2  ;;  %v54_v16 = vrot.slane %v53_v53, 2 }
  0x15   :  { %v105_v22 = vadd.f32 %v104_v18, %v103_v14  ;;  %v111_v23 = vadd.f32 %v110_v19, %v109_v15 }
  0x16   :  { %v66_v24 = vrot.slane %v65_v20, 1  ;;  %v72_v25 = vrot.slane %v71_v21, 1 }
  0x17   :  { %v106_v26 = vrot.slane %v105_v22, 1  ;;  %v112_v27 = vrot.slane %v111_v23, 1 }
  0x18   :  { %v67_v28 = vadd.f32 %v66_v24, %v65_v20  ;;  %v73_v29 = vadd.f32 %v72_v25, %v71_v21  ;;  %v49_v21 = vadd.f32 %v48_v12, %v47_v50 }
  0x19   :  { %v107_v30 = vadd.f32 %v106_v26, %v105_v22  ;;  %v324_v31 = vadd.f32 %v112_v27, %v111_v23  ;;  %v55_v23 = vadd.f32 %v54_v16, %v53_v53 }
  0x1a   :  { %210 = vrsqrt.f32 %v67_v28  ;;  %vm81_vm0 = vcmp.eq.f32.partialorder %v67_v28, inf  ;;  %vm83_vm1 = vcmp.eq.f32.partialorder %v67_v28, 0.0  ;;  %v84_v57 = vand.u32 2147483648, %v67_v28 }
  0x1b   :  { %212 = vrsqrt.f32 %v73_v29  ;;  %vm93_vm2 = vcmp.eq.f32.partialorder %v73_v29, inf  ;;  %vm95_vm3 = vcmp.eq.f32.partialorder %v73_v29, 0.0  ;;  %v96_v62 = vand.u32 2147483648, %v73_v29 }
  0x1c   :  { %214 = vrsqrt.f32 %v107_v30  ;;  %vm121_vm4 = vcmp.eq.f32.partialorder %v107_v30, inf  ;;  %vm123_vm5 = vcmp.eq.f32.partialorder %v107_v30, 0.0  ;;  %v124_v1 = vand.u32 2147483648, %v107_v30 }
  0x1d   :  { %216 = vrsqrt.f32 %v324_v31  ;;  %vm133_vm6 = vcmp.eq.f32.partialorder %v324_v31, inf  ;;  %v136_v5 = vand.u32 2147483648, %v324_v31  ;;  %vm135_vm7 = vcmp.eq.f32.partialorder %v324_v31, 0.0 }
  0x1e   :  { %v50_v24 = vrot.slane %v49_v21, 1  ;;  %v56_v25 = vrot.slane %v55_v23, 1 }
  0x20   :  { %v211_v33 = vpop.eup %210 }
  0x21   :  { %v213_v35 = vpop.eup %212  ;;  %v75_v36 = vmul.f32 %v211_v33, %v67_v28 }
  0x22   :  { %v215_v37 = vpop.eup %214  ;;  %v87_v38 = vmul.f32 %v213_v35, %v73_v29 }
  0x23   :  { %v217_v39 = vpop.eup %216  ;;  %v76_v41 = vmul.f32 %v211_v33, %v75_v36  ;;  %v115_v42 = vmul.f32 %v215_v37, %v107_v30 }
  0x24   :  { %v88_v44 = vmul.f32 %v213_v35, %v87_v38  ;;  %v127_v45 = vmul.f32 %v217_v39, %v324_v31 }
  0x25   :  { %v77_v46 = vmul.f32 0.5, %v76_v41  ;;  %v116_v47 = vmul.f32 %v215_v37, %v115_v42 }
  0x26   :  { %v89_v48 = vmul.f32 0.5, %v88_v44  ;;  %v128_v49 = vmul.f32 %v217_v39, %v127_v45 }
  0x27   :  { %v78_v51 = vsub.f32 1.5, %v77_v46  ;;  %v117_v52 = vmul.f32 0.5, %v116_v47 }
  0x28   :  { %v90_v54 = vsub.f32 1.5, %v89_v48  ;;  %v129_v55 = vmul.f32 0.5, %v128_v49 }
  0x29   :  { %v79_v56 = vmul.f32 %v211_v33, %v78_v51  ;;  %v118_v58 = vsub.f32 1.5, %v117_v52  ;;  %v182_v52 = vlaneseq }
  0x2a   :  { %v91_v59 = vmul.f32 %v213_v35, %v90_v54  ;;  %v130_v60 = vsub.f32 1.5, %v129_v55 }
  0x2b   :  { %v80_v61 = vmul.f32 %v79_v56, %v67_v28  ;;  %v119_v63 = vmul.f32 %v215_v37, %v118_v58 }
  0x2c   :  { %v92_v0 = vmul.f32 %v91_v59, %v73_v29  ;;  %v131_v2 = vmul.f32 %v217_v39, %v130_v60 }
  0x2d   :  { %v82_v3 = vsel %vm81_vm0, %v67_v28, %v80_v61  ;;  %v120_v4 = vmul.f32 %v119_v63, %v107_v30  ;;  %v51_v28 = vadd.f32 %v50_v24, %v49_v21  ;;  %vm179_vm0 = vcmask 1040384  }
  0x2e   :  { %v85_v6 = vsel %vm83_vm1, %v84_v57, %v82_v3  ;;  %v94_v7 = vsel %vm93_vm2, %v73_v29, %v92_v0  ;;  %v132_v8 = vmul.f32 %v131_v2, %v324_v31  ;;  %vm184_vm1 = vcmp.lt.s32.totalorder %v182_v52, 256 }
  0x2f   :  { %v97_v9 = vsel %vm95_vm3, %v96_v62, %v94_v7  ;;  %v98_v10 = vadd.f32 1e-10, %v85_v6  ;;  %v122_v11 = vsel %vm121_vm4, %v107_v30, %v120_v4  ;;  %v57_v30 = vadd.f32 %v56_v25, %v55_v23 }
  0x30   :  { %v99_v13 = vadd.f32 1e-10, %v97_v9  ;;  %v125_v14 = vsel %vm123_vm5, %v124_v1, %v122_v11  ;;  %v134_v15 = vsel %vm133_vm6, %v324_v31, %v132_v8  ;;  %v58_v41 = vadd.f32 1e-10, %v51_v28 }
  0x31   :  { %v137_v17 = vsel %vm135_vm7, %v136_v5, %v134_v15  ;;  %v138_v18 = vadd.f32 1e-10, %v125_v14  ;;  %v59_v44 = vadd.f32 1e-10, %v57_v30 }
  0x32   :  { %v139_v19 = vadd.f32 1e-10, %v137_v17 }
  0x33   :  { %v140_v20 = vmul.f32 %v138_v18, %v98_v10 }
  0x34   :  { %v141_v22 = vmul.f32 %v139_v19, %v99_v13 }
  0x35   :  { %218 = vrcp.f32 %v140_v20  ;;  %vm147_vm8 = vweird.f32 %v140_v20  ;;  %v153_v32 = vand.u32 2147483648, %v140_v20  ;;  %v151_v34 = vand.u32 2147483647, %v140_v20 }
  0x36   :  { %220 = vrcp.f32 %v141_v22  ;;  %v168_v35 = vand.u32 2147483648, %v141_v22  ;;  %vm162_vm10 = vweird.f32 %v141_v22  ;;  %v166_v37 = vand.u32 2147483647, %v141_v22 }
  0x37   :  { %v154_v39 = vor.u32 1.1754944e-38, %v153_v32  ;;  %vm152_vm13 = vcmp.eq.f32.partialorder %v151_v34, 8.507059e+37 }
  0x38   :  { %v169_v43 = vor.u32 1.1754944e-38, %v168_v35  ;;  %vm167_vm15 = vcmp.eq.f32.partialorder %v166_v37, 8.507059e+37 }
  0x3b   :  { %v219_v26 = vpop.eup %218 }
  0x3c   :  { %v221_v27 = vpop.eup %220  ;;  %v143_v29 = vmul.f32 %v219_v26, %v140_v20  ;;  %vm148_vm9 = vweird.f32 %v219_v26 }
  0x3d   :  { %v158_v31 = vmul.f32 %v221_v27, %v141_v22  ;;  %vm163_vm11 = vweird.f32 %v221_v27  ;;  %vm149_vm12 = vmor %vm147_vm8, %vm148_vm9 }
  0x3e   :  { %v144_v33 = vsub.f32 1.0, %v143_v29  ;;  %vm164_vm14 = vmor %vm162_vm10, %vm163_vm11 }
  0x3f   :  { %v159_v36 = vsub.f32 1.0, %v158_v31 }
  0x40   :  { %v145_v38 = vmul.f32 %v219_v26, %v144_v33 }
  0x41   :  { %v160_v40 = vmul.f32 %v221_v27, %v159_v36 }
  0x42   :  { %v146_v42 = vadd.f32 %v219_v26, %v145_v38 }
  0x43   :  { %v161_v45 = vadd.f32 %v221_v27, %v160_v40 }
  0x44   :  { %v150_v46 = vsel %vm149_vm12, %v219_v26, %v146_v42 }
  0x45   :  { %v155_v47 = vsel %vm152_vm13, %v154_v39, %v150_v46  ;;  %v165_v48 = vsel %vm164_vm14, %v221_v27, %v161_v45 }
  0x46   :  { %v156_v49 = vmul.f32 %v155_v47, %v58_v41  ;;  %v170_v50 = vsel %vm167_vm15, %v169_v43, %v165_v48 }
  0x47   :  { %v171_v51 = vmul.f32 %v170_v50, %v59_v44 }
  0x48   :  { %v205_v53 = vclamps-f32 %v156_v49, 1.0 }
  0x49   :  { %v206_v54 = vclamps-f32 %v171_v51, 1.0 }
  0x4b   :  { %v178_v55 = vrot.slane %v206_v54, 7 }
  0x4d   :  { %v180_v56 = vsel %vm179_vm0, %v205_v53, %v178_v55 }
  0x4e   :  { %186 = vst.msk [vmem:[#allocation7] sm:$0x3] %vm184_vm1, %v180_v56 }
  0x4f   :  { %197 = dma.vmem_to_hbm [thread:$0]  %s193_s1, 32, %s195_s21, [#allocation4]  }
  0x50   :  { %298 = dma.done.wait [#allocation4], 32  }
  0x51   :  { %299 = vsyncadd [#allocation4], 4294967264 }
  0x52   :  { %202 = vsyncpa [#allocation3], 1 }
  0x53   :  { %203 = vsyncpa [#allocation6], 1 }
  0x54   :  { %204 = vsyncpa [#allocation4], 1 }

</bundles_post_ra>
